<compile_context>
chip_gen: v7x
topology: tpu7x:2x2x1
jax: 0.10.0
libtpu: 0.0.40
codegen_flags: <defaults>
</compile_context>

<pallas_src>
import math
import functools

import jax
import jax.numpy as jnp
from jax.experimental import pallas as pl
from jax.experimental.pallas import tpu as pltpu


# Fits under v7x's 64 MiB physical VMEM with headroom; far above actual usage.
_VMEM_LIMIT = 48 * 1024 * 1024


# ------------------------------ helpers -------------------------------------

def _tile(dim, target):
    """Largest tile <= target dividing `dim`, preferring (8,128)-friendly sizes."""
    if dim <= target:
        return dim
    for t in range(target, 0, -1):          # prefer lane-aligned tiles
        if dim % t == 0 and t % 128 == 0:
            return t
    for t in range(target, 0, -1):          # then sublane-aligned tiles
        if dim % t == 0 and t % 8 == 0:
            return t
    # TODO(synk): ragged (non 8-aligned) dims would need a masking path.
    return dim


# --------------------------- Linear kernels ----------------------------------
# Tiled matmul with a Cin-reduction grid axis and an f32 VMEM accumulator so
# large model widths do not force the (tm, Cin)/(Cin, tn) strips into VMEM.

def _linear_bias_kernel(x_ref, w_ref, b_ref, o_ref, acc_ref):
    k_i = pl.program_id(2)

    @pl.when(k_i == 0)
    def _init():
        acc_ref[...] = jnp.zeros_like(acc_ref)

    acc_ref[...] += jnp.dot(x_ref[...], w_ref[...],
                            preferred_element_type=jnp.float32)

    @pl.when(k_i == pl.num_programs(2) - 1)
    def _finalize():
        o_ref[...] = (acc_ref[...] +
                      b_ref[...].astype(jnp.float32)).astype(o_ref.dtype)


def _linear_nobias_kernel(x_ref, w_ref, o_ref, acc_ref):
    k_i = pl.program_id(2)

    @pl.when(k_i == 0)
    def _init():
        acc_ref[...] = jnp.zeros_like(acc_ref)

    acc_ref[...] += jnp.dot(x_ref[...], w_ref[...],
                            preferred_element_type=jnp.float32)

    @pl.when(k_i == pl.num_programs(2) - 1)
    def _finalize():
        o_ref[...] = acc_ref[...].astype(o_ref.dtype)


def pallas_linear(x, w, b=None, *, tm=256, tn=512, tk=512):
    """x: (T, Cin) bf16, w: (Cin, Cout) bf16, b: (Cout,) bf16 or None."""
    T, Cin = x.shape
    Cout = w.shape[1]
    tm = _tile(T, tm)
    tn = _tile(Cout, tn)
    tk = _tile(Cin, tk)
    grid = (T // tm, Cout // tn, Cin // tk)

    in_specs = [
        pl.BlockSpec((tm, tk), lambda i, j, kk: (i, kk)),
        pl.BlockSpec((tk, tn), lambda i, j, kk: (kk, j)),
    ]
    args = [x, w]
    if b is not None:
        in_specs.append(pl.BlockSpec((1, tn), lambda i, j, kk: (0, j)))
        args.append(b.reshape(1, Cout))
        kernel = _linear_bias_kernel
    else:
        kernel = _linear_nobias_kernel

    return pl.pallas_call(
        kernel,
        out_shape=jax.ShapeDtypeStruct((T, Cout), x.dtype),
        grid_spec=pltpu.PrefetchScalarGridSpec(
            num_scalar_prefetch=0,
            grid=grid,
            in_specs=in_specs,
            out_specs=pl.BlockSpec((tm, tn), lambda i, j, kk: (i, j)),
            scratch_shapes=[pltpu.VMEM((tm, tn), jnp.float32)],
        ),
        compiler_params=pltpu.CompilerParams(
            dimension_semantics=("parallel", "parallel", "arbitrary"),
            vmem_limit_bytes=_VMEM_LIMIT),
    )(*args)


# ------------------------ Flash attention kernel ------------------------------

def _flash_attn_kernel(q_ref, k_ref, v_ref, o_ref,
                       m_ref, l_ref, acc_ref,
                       *, num_heads, head_dim):
    kv_i = pl.program_id(2)
    tq = q_ref.shape[0]

    @pl.when(kv_i == 0)
    def _init():
        m_ref[...] = jnp.full(m_ref.shape, -1e30, jnp.float32)
        l_ref[...] = jnp.zeros(l_ref.shape, jnp.float32)
        acc_ref[...] = jnp.zeros(acc_ref.shape, jnp.float32)

    q = q_ref[...]                 # (tq,  C) bf16, pre-scaled by 1/sqrt(D) (in Wq)
    k = k_ref[...]                 # (tkv, C) bf16
    v = v_ref[...]                 # (tkv, C) bf16

    # One transpose per KV block: lane-dense (C, tkv) result; per-head K becomes
    # a cheap sublane slice instead of a masked 32-lane extract per head.
    kt = k.T                       # (C, tkv) bf16

    m_prev = m_ref[...]            # (tq, H) f32
    l_prev = l_ref[...]            # (tq, H) f32

    m_cols, l_cols, alpha_blks, pv_blks = [], [], [], []
    for h in range(num_heads):
        sl = slice(h * head_dim, (h + 1) * head_dim)
        qh = q[:, sl]              # (tq,  D) bf16
        kth = kt[sl, :]            # (D, tkv) bf16  (sublane slice)
        vh = v[:, sl]              # (tkv, D) bf16

        # (tq, D) x (D, tkv) -> (tq, tkv) f32 on the MXU (scale already in Wq).
        s = jnp.dot(qh, kth, preferred_element_type=jnp.float32)

        m_prev_h = m_prev[:, h:h + 1]                              # (tq, 1)
        m_new_h = jnp.maximum(m_prev_h, jnp.max(s, axis=-1, keepdims=True))
        alpha_h = jnp.exp(m_prev_h - m_new_h)                      # (tq, 1)
        p = jnp.exp(s - m_new_h)                                   # (tq, tkv) f32
        l_new_h = alpha_h * l_prev[:, h:h + 1] + jnp.sum(p, axis=-1,
                                                         keepdims=True)

        pv_blks.append(jnp.dot(p.astype(v.dtype), vh,
                               preferred_element_type=jnp.float32))  # (tq, D)
        alpha_blks.append(jnp.broadcast_to(alpha_h, (tq, head_dim)))
        m_cols.append(m_new_h)
        l_cols.append(l_new_h)

    # Single lane-dense (tq, C) FMA for rescale + accumulate (no masked stores).
    alpha_full = jnp.concatenate(alpha_blks, axis=1)               # (tq, C) f32
    pv_full = jnp.concatenate(pv_blks, axis=1)                     # (tq, C) f32
    acc_ref[...] = alpha_full * acc_ref[...] + pv_full
    m_ref[...] = jnp.concatenate(m_cols, axis=1)                   # (tq, H)
    l_ref[...] = jnp.concatenate(l_cols, axis=1)                   # (tq, H)

    @pl.when(kv_i == pl.num_programs(2) - 1)
    def _finalize():
        inv_l = pl.reciprocal(l_ref[...], approx=True)             # (tq, H)
        inv_full = jnp.concatenate(
            [jnp.broadcast_to(inv_l[:, h:h + 1], (tq, head_dim))
             for h in range(num_heads)], axis=1)                   # (tq, C)
        o_ref[...] = (acc_ref[...] * inv_full).astype(o_ref.dtype)


def pallas_flash_attention_bsh(q, k, v, *, num_heads, head_dim,
                               tq=256, tkv=256):
    """q: (B, Sq, C), k/v: (B, Skv, C) bf16, BSH layout in and out.

    The 1/sqrt(head_dim) softmax scale must already be folded into q (wrapper
    folds it into Wq)."""
    B, Sq, C = q.shape
    Skv = k.shape[1]
    tq = _tile(Sq, tq)
    tkv = _tile(Skv, tkv)

    kernel = functools.partial(
        _flash_attn_kernel, num_heads=num_heads, head_dim=head_dim)

    return pl.pallas_call(
        kernel,
        out_shape=jax.ShapeDtypeStruct((B, Sq, C), q.dtype),
        grid_spec=pltpu.PrefetchScalarGridSpec(
            num_scalar_prefetch=0,
            grid=(B, Sq // tq, Skv // tkv),
            in_specs=[
                pl.BlockSpec((None, tq, C), lambda b, i, j: (b, i, 0)),
                pl.BlockSpec((None, tkv, C), lambda b, i, j: (b, j, 0)),
                pl.BlockSpec((None, tkv, C), lambda b, i, j: (b, j, 0)),
            ],
            out_specs=pl.BlockSpec((None, tq, C), lambda b, i, j: (b, i, 0)),
            scratch_shapes=[
                pltpu.VMEM((tq, num_heads), jnp.float32),   # running max (per head)
                pltpu.VMEM((tq, num_heads), jnp.float32),   # running sum (per head)
                pltpu.VMEM((tq, C), jnp.float32),           # lane-dense running acc
            ],
        ),
        compiler_params=pltpu.CompilerParams(
            dimension_semantics=("parallel", "parallel", "arbitrary"),
            vmem_limit_bytes=_VMEM_LIMIT),
    )(q, k, v)


# ----------------------------- Module wrapper --------------------------------

def multi_head_attention_bsh(query, key=None, mask=None, *,
                             params, num_heads, head_dim):
    """Forward of MultiHeadAttentionBSH (use_rope=False, dropout p=0)."""
    if mask is not None:
        # TODO(synk): atten_mask path (npu_fusion_attention atten_mask) not implemented.
        raise NotImplementedError("atten_mask is not supported in this kernel")

    input_ndim = query.ndim
    if input_ndim == 4:
        b4, c4, h4, w4 = query.shape
        query = query.reshape(b4, c4, h4 * w4).transpose(0, 2, 1)

    self_attn = key is None
    key = query if key is None else key

    B, Sq, query_dim = query.shape
    Skv = key.shape[1]
    inner_dim = num_heads * head_dim
    scale = 1.0 / math.sqrt(head_dim)

    wq, wk, wv = params["wq"], params["wk"], params["wv"]
    bq, bk, bv = params["bq"], params["bk"], params["bv"]

    # Fold the softmax scale into Wq (and bq): removes a (tq, tkv) f32 multiply
    # per head per KV step inside the attention kernel.
    wq_s = (wq.astype(jnp.float32) * scale).astype(wq.dtype)
    bq_s = None if bq is None else (bq.astype(jnp.float32) * scale).astype(bq.dtype)

    xq = query.reshape(B * Sq, -1)
    xk = key.reshape(B * Skv, -1)

    if self_attn:
        # Fused QKV projection: x read once, single kernel launch, 3x wider N.
        w_qkv = jnp.concatenate([wq_s, wk, wv], axis=1)
        b_qkv = None
        if bq is not None:
            b_qkv = jnp.concatenate([bq_s, bk, bv], axis=0)
        qkv = pallas_linear(xq, w_qkv, b_qkv)
        q = qkv[:, :inner_dim]
        k = qkv[:, inner_dim:2 * inner_dim]
        v = qkv[:, 2 * inner_dim:]
    else:
        q = pallas_linear(xq, wq_s, bq_s)
        w_kv = jnp.concatenate([wk, wv], axis=1)
        b_kv = None if bk is None else jnp.concatenate([bk, bv], axis=0)
        kv = pallas_linear(xk, w_kv, b_kv)
        k = kv[:, :inner_dim]
        v = kv[:, inner_dim:]

    q = q.reshape(B, Sq, inner_dim)
    k = k.reshape(B, Skv, inner_dim)
    v = v.reshape(B, Skv, inner_dim)

    # Fused BSH flash attention (no head transposes; output already (B, Sq, C)).
    o = pallas_flash_attention_bsh(q, k, v,
                                   num_heads=num_heads, head_dim=head_dim)

    # Output projection (bias=True). Dropout p=0.0 -> identity.
    out = pallas_linear(o.reshape(B * Sq, inner_dim), params["wp"], params["bp"])
    out = out.reshape(B, Sq, query_dim)

    if input_ndim == 4:
        out = out.transpose(0, 2, 1).reshape(b4, c4, h4, w4)
    return out


# -------------------------------- Reference -----------------------------------

def reference(query, key, params, num_heads, head_dim):
    if query.ndim == 4:
        b4, c4, h4, w4 = query.shape
        query = query.reshape(b4, c4, h4 * w4).transpose(0, 2, 1)
    key = query if key is None else key
    B, Sq, _ = query.shape
    Skv = key.shape[1]
    inner_dim = num_heads * head_dim
    scale = 1.0 / math.sqrt(head_dim)

    def lin(t, w, b):
        y = jnp.dot(t.astype(jnp.float32), w.astype(jnp.float32))
        if b is not None:
            y = y + b.astype(jnp.float32)
        return y.astype(t.dtype)

    q = lin(query, params["wq"], params["bq"]).reshape(B, Sq, num_heads, head_dim)
    k = lin(key, params["wk"], params["bk"]).reshape(B, Skv, num_heads, head_dim)
    v = lin(key, params["wv"], params["bv"]).reshape(B, Skv, num_heads, head_dim)

    qf = q.transpose(0, 2, 1, 3).astype(jnp.float32)
    kf = k.transpose(0, 2, 1, 3).astype(jnp.float32)
    vf = v.transpose(0, 2, 1, 3).astype(jnp.float32)
    s = jnp.einsum("bhnd,bhmd->bhnm", qf, kf) * scale
    p = jax.nn.softmax(s, axis=-1)
    o = jnp.einsum("bhnm,bhmd->bhnd", p, vf)
    o = o.transpose(0, 2, 1, 3).reshape(B, Sq, inner_dim).astype(query.dtype)
    return lin(o, params["wp"], params["bp"])


# ---------------------------------- Main --------------------------------------

if __name__ == "__main__":
    query_dim = 128
    num_heads = 4
    head_dim = 32            # inner_dim = 128
    inner_dim = num_heads * head_dim
    B, S = 2, 256            # self-attention (key=None), BSH layout

    key0 = jax.random.PRNGKey(0)
    ks = jax.random.split(key0, 10)

    def linear_init(kw, kb, fan_in, fan_out, bias):
        bound = 1.0 / math.sqrt(fan_in)
        w = jax.random.uniform(kw, (fan_in, fan_out), jnp.float32,
                               -bound, bound).astype(jnp.bfloat16)
        b = None
        if bias:
            b = jax.random.uniform(kb, (fan_out,), jnp.float32,
                                   -bound, bound).astype(jnp.bfloat16)
        return w, b

    wq, bq = linear_init(ks[0], ks[1], query_dim, inner_dim, bias=False)
    wk, bk = linear_init(ks[2], ks[3], query_dim, inner_dim, bias=False)
    wv, bv = linear_init(ks[4], ks[5], query_dim, inner_dim, bias=False)
    wp, bp = linear_init(ks[6], ks[7], inner_dim, query_dim, bias=True)
    params = {"wq": wq, "bq": bq, "wk": wk, "bk": bk,
              "wv": wv, "bv": bv, "wp": wp, "bp": bp}

    x = jax.random.normal(ks[8], (B, S, query_dim), jnp.float32).astype(jnp.bfloat16)

    out = multi_head_attention_bsh(x, None, None, params=params,
                                   num_heads=num_heads, head_dim=head_dim)
    out = jax.block_until_ready(out)

    ref = jax.block_until_ready(reference(x, None, params, num_heads, head_dim))
    err = float(jnp.max(jnp.abs(out.astype(jnp.float32) - ref.astype(jnp.float32))))
    if not (err < 5e-2):
        raise AssertionError(f"mismatch vs reference, max abs err = {err}")

    print("KERNEL_OK")
</pallas_src>

<mosaic_0001>
module attributes {stable_mosaic.version = 11 : i64} {
  func.func @_linear_nobias_kernel(%arg0: i32, %arg1: i32, %arg2: i32, %arg3: memref<256x128xbf16, #tpu.memory_space<vmem>>, %arg4: memref<128x384xbf16, #tpu.memory_space<vmem>>, %arg5: memref<256x384xbf16, #tpu.memory_space<vmem>>, %arg6: memref<256x384xf32, #tpu.memory_space<vmem>>) attributes {dimension_semantics = [#tpu.dimension_semantics<parallel>, #tpu.dimension_semantics<parallel>, #tpu.dimension_semantics<arbitrary>], iteration_bounds = array<i64: 2, 1, 1>, scalar_prefetch = 0 : i64, scratch_operands = 1 : i64, tpu.core_type = #tpu.core_type<tc>, window_params = [{transform_indices = @transform_0, window_bounds = array<i64: 256, 128>}, {transform_indices = @transform_1, window_bounds = array<i64: 128, 384>}, {transform_indices = @transform_2, window_bounds = array<i64: 256, 384>}]} {
    %c0_i32 = arith.constant 0 : i32
    %0 = arith.cmpi eq, %arg2, %c0_i32 : i32
    %1 = arith.extui %0 : i1 to i32
    %c0_i32_0 = arith.constant 0 : i32
    %2 = arith.cmpi ne, %1, %c0_i32_0 : i32
    scf.if %2 {
      %cst_10 = arith.constant 0.000000e+00 : f32
      %12 = vector.broadcast %cst_10 : f32 to vector<256x384xf32>
      %c0_11 = arith.constant 0 : index
      %c0_12 = arith.constant 0 : index
      %13 = vector.load %arg6[%c0_11, %c0_12] : memref<256x384xf32, #tpu.memory_space<vmem>>, vector<256x384xf32>
      tpu.vector_store %arg6[%c0_11, %c0_12], %12 {strides = array<i32>} : memref<256x384xf32, #tpu.memory_space<vmem>>, vector<256x384xf32>,
    } else {
    }
    %c0 = arith.constant 0 : index
    %c0_1 = arith.constant 0 : index
    %3 = vector.load %arg6[%c0, %c0_1] : memref<256x384xf32, #tpu.memory_space<vmem>>, vector<256x384xf32>
    %c0_2 = arith.constant 0 : index
    %c0_3 = arith.constant 0 : index
    %4 = vector.load %arg3[%c0_2, %c0_3] : memref<256x128xbf16, #tpu.memory_space<vmem>>, vector<256x128xbf16>
    %c0_4 = arith.constant 0 : index
    %c0_5 = arith.constant 0 : index
    %5 = vector.load %arg4[%c0_4, %c0_5] : memref<128x384xbf16, #tpu.memory_space<vmem>>, vector<128x384xbf16>
    %cst = arith.constant dense<0.000000e+00> : vector<256x384xf32>
    %6 = tpu.matmul %4, %5, %cst {dimension_numbers = #tpu.dot_dimension_numbers<[1], [0], [0], [1], [0, 0, 1, 1], [], []>} : vector<256x128xbf16>, vector<128x384xbf16>, vector<256x384xf32> -> vector<256x384xf32>
    %7 = arith.addf %3, %6 : vector<256x384xf32>
    %c0_6 = arith.constant 0 : index
    %c0_7 = arith.constant 0 : index
    %8 = vector.load %arg6[%c0_6, %c0_7] : memref<256x384xf32, #tpu.memory_space<vmem>>, vector<256x384xf32>
    tpu.vector_store %arg6[%c0_6, %c0_7], %7 {strides = array<i32>} : memref<256x384xf32, #tpu.memory_space<vmem>>, vector<256x384xf32>,
    %c0_i32_8 = arith.constant 0 : i32
    %9 = arith.cmpi eq, %arg2, %c0_i32_8 : i32
    %10 = arith.extui %9 : i1 to i32
    %c0_i32_9 = arith.constant 0 : i32
    %11 = arith.cmpi ne, %10, %c0_i32_9 : i32
    scf.if %11 {
      %c0_10 = arith.constant 0 : index
      %c0_11 = arith.constant 0 : index
      %12 = vector.load %arg6[%c0_10, %c0_11] : memref<256x384xf32, #tpu.memory_space<vmem>>, vector<256x384xf32>
      %13 = arith.truncf %12 : vector<256x384xf32> to vector<256x384xbf16>
      %c0_12 = arith.constant 0 : index
      %c0_13 = arith.constant 0 : index
      %14 = vector.load %arg5[%c0_12, %c0_13] : memref<256x384xbf16, #tpu.memory_space<vmem>>, vector<256x384xbf16>
      tpu.vector_store %arg5[%c0_12, %c0_13], %13 {strides = array<i32>} : memref<256x384xbf16, #tpu.memory_space<vmem>>, vector<256x384xbf16>,
    } else {
    }
    return
  }
  func.func @transform_0(%arg0: i32, %arg1: i32, %arg2: i32) -> (i32, i32) {
    %c0_i32 = arith.constant 0 : i32
    return %arg0, %arg2 : i32, i32
  }
  func.func @transform_1(%arg0: i32, %arg1: i32, %arg2: i32) -> (i32, i32) {
    %c0_i32 = arith.constant 0 : i32
    return %arg2, %arg1 : i32, i32
  }
  func.func @transform_2(%arg0: i32, %arg1: i32, %arg2: i32) -> (i32, i32) {
    %c0_i32 = arith.constant 0 : i32
    return %arg0, %arg1 : i32, i32
  }
}

</mosaic_0001>

<bundles_post_ra>
// kernel: tpu_custom_call.1
= control target key start
LH: loop header
LB: loop body
LE: loop exit
PB: predicated region body
PF: predicated region fallthrough
CT: control target
= control target key end

     0   :  { %7 = vsyncpa [#allocation4], 0  ;;  %s2757_s0 = inlined_call_operand.hbm [shape: bf16[512,128], index: 0, kind: input, shape index: {}]   ;;  %s2758_s1 = inlined_call_operand.hbm [shape: bf16[128,384], index: 1, kind: input, shape index: {}]   ;;  %s2759_s2 = inlined_call_operand.hbm [shape: bf16[512,384], index: 2, kind: output, shape index: {}]  }
   0x1   :  { %9 = vsyncpa [#allocation4 + $0x1], 0 }
   0x2   :  { %10 = vsyncpa [#allocation7], 0 }
   0x3   :  { %11 = vsyncpa [#allocation5], 0 }
   0x4   :  { %13 = vsyncpa [#allocation5 + $0x1], 0  ;;  %s2428_s9 = smov 0   ;;  %s2430_s10 = smov 0  }
   0x5   :  { %s2432_s11 = smov 0   ;;  %s2434_s12 = smov 0  }
   0x6   :  { %s2436_s13 = smov 0   ;;  %s2438_s14 = smov 0  }
   0x7 LB: > { %s1854_s15 = sadd.s32 4294967295, %s2401_s14   ;;  %s1855_s16 = sadd.s32 4294967294, %s2401_s14   ;;  %s2401_s14 = sphi %s2438_s14, %s19_s14   ;;  %s2397_s13 = sphi %s2436_s13, %s2783_s13   ;;  %s2393_s12 = sphi %s2434_s12, %s2782_s12   ;;  %s2389_s11 = sphi %s2432_s11, %s2781_s11   ;;  %s2385_s10 = sphi %s2430_s10, %s2780_s10   ;;  %s2381_s9 = sphi %s2428_s9, %s2779_s9  }
   0x8   : > { %p60_p0 = scmp.ne.s32.totalorder %s2385_s10, %s2381_s9  ;;  %p2462_p1 = scmp.eq.s32.totalorder %s1854_s15, 0 }
   0x9   : > { %p2466_p2 = scmp.eq.s32.totalorder %s1854_s15, 1  ;;  %p120_p3 = scmp.eq.s32.totalorder %s1855_s16, 1 }
   0xa   : > { %s2764_s17 = scalar_select %p2462_p1, 1, 0 }
   0xb   : > { %s2765_s18 = scalar_select %p2466_p2, 1, 0 }
   0xc   : > { %p2472_p4 = por %p2462_p1, %p60_p0  ;;  %p1856_p5 = scmp.ge.s32.totalorder %s2401_s14, 1 }
   0xd   : > { %p2477_p6 = por %p120_p3, %p60_p0  ;;  %p127_p7 = scmp.lt.s32.totalorder %s2401_s14, 3 }
   0xe   : > { %s2766_s19 = scalar_select %p2472_p4, 1, 0 }
   0xf   : > { %s2767_s20 = scalar_select %p2477_p6, 1, 0 }
  0x10   : > { %p2482_p8 = pnand %p1856_p5, %p127_p7  ;;  %s2403_s22 = smov [#allocation6]  }
  0x11   : > { %s145_s23 = sshll.u32 %s2403_s22, 4  ;;  %s38_s25 = sadd.s32 1, %s2397_s13  ;;  %s146_s23 = int_to_ptr.vmem [resolvable:$true] %s145_s23 }
  0x12   : > { %s2768_s21 = scalar_select %p2482_p8, 1, 0 }
  0x13   : > { %p2137_p9 = pneg %p2482_p8  ;;  %s2257_s28 = scalar_lea.hbm %s2758_s1, 3072 }
  0x14   : > { %p2258_p12 = scmp.ne.s32.totalorder %s2758_s1, %s2257_s28  ;;  %p2264_p5 = scmp.lt.u32.totalorder %s2257_s28, %s2758_s1 }
  0x15   : > { %p2491_p11 = pnand %p2137_p9, %p2462_p1 }
  0x17   : > { %p2259_p13 = pneg %p2491_p11 }
  0x19   : > { %p2260_p0 = pnand %p2259_p13, %p2258_p12 }
  0x1b   : > { %p2261_p3 = pneg %p2260_p0 }
  0x1d   : > { %p2266_p7 = pnand %p2264_p5, %p2261_p3 }
  0x1f   : > { %2269 = shalt.err (!%p2266_p7)
}
  0x20   : > { %s2270_s5 = scalar_lea.vmem %s146_s23, 3072  ;;  %p2278_p1 = scmp.lt.s32.totalorder %s146_s23, %s146_s23 }
  0x21   : > { %p2271_p9 = scmp.ne.s32.totalorder %s146_s23, %s2270_s5  ;;  %p2279_p4 = scmp.lt.s32.totalorder %s2270_s5, %s2270_s5 }
  0x23   : > { %p2273_p10 = pnand %p2271_p9, %p2259_p13  ;;  %p2280_p8 = por %p2279_p4, %p2278_p1 }
  0x25   : > { %p2274_p6 = pneg %p2273_p10 }
  0x27   : > { %p2281_p2 = pnand %p2280_p8, %p2274_p6 }
  0x29   : > { %2284 = shalt.err (!%p2281_p2)
}
  0x2a   : > { %s2404_s6 = smov 192   ;;  %s2405_s7 = smov 12  }
  0x2b   : > { %2140 = dma.hbm_to_vmem [thread:$0]  (!%p2491_p11), %s2758_s1, 3072, %s146_s23, [#allocation7], %s2404_s6, %s2404_s6, %s2405_s7  }
  0x2c   : > { %p40_p1 = scmp.ge.s32.totalorder %s38_s25, 2  ;;  %s47_s16 = sadd.s32 1, %s2389_s11 }
  0x2d   : > { %p54_p2 = scmp.ne.s32.totalorder %s2389_s11, %s2385_s10  ;;  %p55_p4 = scmp.eq.s32.totalorder %s2401_s14, 0 }
  0x2e   : > { %s2785_s25 = smov (%p40_p1, %s38_s25), 0  ;;  %p2771_p8 = scmp.ne.s32.totalorder %s2765_s18, 0 }
  0x2f   : > { %p2518_p6 = por %p55_p4, %p54_p2  ;;  %s42_s24 = ssub.s32 %s2397_s13, %s2785_s25 }
  0x30   : > { %p2524_p10 = por %p2771_p8, %p54_p2  ;;  %p2150_p12 = scmp.lt.s32.totalorder %s2401_s14, 2 }
  0x31   : > { %p45_p11 = scmp.eq.s32.totalorder %s42_s24, 0  ;;  %s159_s23 = sand.u32 1, %s2389_s11  }
  0x32   : > { %s1859_s27 = sshll.u32 %s159_s23, 7  ;;  %s1974_s29 = sshll.u32 %s2397_s13, 11 }
  0x33   : > { %s2533_s28 = scalar_select %p45_p11, %s2389_s11, %s47_s16  }
  0x34   : > { %s2539_s4 = scalar_lea.hbm %s2757_s0, %s1974_s29  ;;  %s163_s18 = scalar_lea.vmem [#allocation3], %s1859_s27 }
  0x35   : > { %s171_s5 = sshll.u32 %s163_s18, 4  ;;  %p2545_p13 = pnand %p2150_p12, %p2518_p6  ;;  %s2541_s5 = int_to_ptr.vmem [resolvable:$true] %s171_s5 }
  0x36   : > { %s2549_s7 = scalar_lea.sflag [#allocation4], %s159_s23  ;;  %s2285_s8 = scalar_lea.hbm %s2539_s4, 2048 }
  0x37   : > { %p2286_p0 = scmp.ne.s32.totalorder %s2539_s4, %s2285_s8  ;;  %p2287_p3 = pneg %p2545_p13 }
  0x38   : > { %s2290_s22 = scalar_lea.hbm %s2757_s0, 4096  ;;  %p2291_p9 = scmp.lt.u32.totalorder %s2539_s4, %s2757_s0 }
  0x39   : > { %p2288_p5 = pnand %p2287_p3, %p2286_p0  ;;  %p2292_p1 = scmp.lt.u32.totalorder %s2290_s22, %s2285_s8 }
  0x3a   : > { %p2294_p4 = scmp.lt.u32.totalorder %s2285_s8, %s2539_s4 }
  0x3b   : > { %p2289_p7 = pneg %p2288_p5  ;;  %p2293_p2 = por %p2292_p1, %p2291_p9 }
  0x3d   : > { %p2295_p6 = por %p2294_p4, %p2293_p2 }
  0x3f   : > { %p2296_p8 = pnand %p2295_p6, %p2289_p7 }
  0x41   : > { %2299 = shalt.err (!%p2296_p8)
}
  0x42   : > { %s2300_s23 = scalar_lea.vmem %s2541_s5, 2048  ;;  %s2406_s29 = smov [#allocation3]  }
  0x43   : > { %p2301_p12 = scmp.ne.s32.totalorder %s2541_s5, %s2300_s23  ;;  %s2305_s30 = sshll.u32 %s2406_s29, 4  ;;  %s2306_s30 = int_to_ptr.vmem [resolvable:$false] %s2305_s30 }
  0x44   : > { %s2307_s3 = scalar_lea.vmem %s2306_s30, 4096  ;;  %p2308_p5 = scmp.lt.s32.totalorder %s2541_s5, %s2306_s30 }
  0x45   : > { %p2303_p11 = pnand %p2301_p12, %p2287_p3  ;;  %p2309_p9 = scmp.lt.s32.totalorder %s2307_s3, %s2300_s23 }
  0x47   : > { %p2304_p0 = pneg %p2303_p11  ;;  %p2310_p1 = por %p2309_p9, %p2308_p5 }
  0x49   : > { %p2311_p2 = pnand %p2310_p1, %p2304_p0 }
  0x4b   : > { %2314 = shalt.err (!%p2311_p2)
}
  0x4c   : > { %s2407_s18 = smov 64   ;;  %s2408_s8 = smov 4  }
  0x4d   : > { %2144 = dma.hbm_to_vmem [thread:$0]  (!%p2545_p13), %s2539_s4, 2048, %s2541_s5, %s2549_s7, %s2407_s18, %s2407_s18, %s2408_s8  }
  0x4e   : > { %p2774_p3 = scmp.ne.s32.totalorder %s2768_s21, 0 }
  0x4f   : > { %s2580_s15 = sand.u32 (!%p2774_p3), 1, %s2385_s10   ;;  %p2775_p7 = scmp.ne.s32.totalorder (!%p2774_p3), %s2766_s19, 0 }
  0x50   : > { %183 = sbr.rel (%p2774_p3) target bundleno = 445 (0x1bd), region = 28  ;;  %s1863_s16 = sshll.u32 (!%p2774_p3), %s2580_s15, 7 }
  0x51   : > { %s186_s22 = scalar_lea.sflag (!%p2774_p3), [#allocation4], %s2580_s15  ;;  %s2584_s24 = scalar_lea.vmem (!%p2774_p3), [#allocation3], %s1863_s16 }
  0x57   : > { %2368 = dma.done.wait (%p2775_p7), %s186_s22, 2048  }
  0x58   : > { %2370 = vsyncadd (%p2775_p7), %s186_s22, 4294965248  ;;  %p2776_p13 = scmp.ne.s32.totalorder %s2764_s17, 0 }
  0x5a   : > { %2372 = dma.done.wait (%p2776_p13), [#allocation7], 3072  }
  0x5b   : > { %2374 = vsyncadd (%p2776_p13), [#allocation7], 4294964224  ;;  %v2409_v0 = vmov 0   ;;  %v2209_v1 = vld [vmem:[#allocation6 + $0x4] ss:$12 sps:$4 sm:$0xff]   ;;  %v2237_v22 = vld [vmem:[%s2584_s24 + $0x8] sm:$0xff]  }
  0x5c   : > { %736 = vmatprep.mubr.bf16.mxu0 %v2409_v0  ;;  %856 = vmatprep.mubr.bf16.mxu1 %v2409_v0  ;;  %v2211_v2 = vld [vmem:[#allocation6] ss:$12 sps:$4 sm:$0xff]   ;;  %v2212_v3 = vld [vmem:[#allocation6 + $0x1c] ss:$12 sps:$4 sm:$0xff]   ;;  %v2214_v4 = vld [vmem:[#allocation6 + $0x18] ss:$12 sps:$4 sm:$0xff]  }
  0x5d   : > { %704 = vmatprep.subr.bf16.mxu0 %v2209_v1  ;;  %2111 = vmatprep.subr.bf16.mxu1 %v2209_v1  ;;  %v2215_v5 = vld [vmem:[#allocation6 + $0x34] ss:$12 sps:$4 sm:$0xff]   ;;  %v2217_v6 = vld [vmem:[#allocation6 + $0x30] ss:$12 sps:$4 sm:$0xff]   ;;  %v2218_v7 = vld [vmem:[#allocation6 + $0x4c] ss:$12 sps:$4 sm:$0xff]  }
  0x5e   : > { %705 = vmatpush1.bf16.msra.mxu0 %v2211_v2  ;;  %2119 = vmatpush1.bf16.msra.mxu1 %v2211_v2  ;;  %v2220_v8 = vld [vmem:[#allocation6 + $0x48] ss:$12 sps:$4 sm:$0xff]   ;;  %v2221_v9 = vld [vmem:[#allocation6 + $0x64] ss:$12 sps:$4 sm:$0xff]   ;;  %v2223_v10 = vld [vmem:[#allocation6 + $0x60] ss:$12 sps:$4 sm:$0xff]  }
  0x5f   : > { %706 = vmatprep.subr.bf16.mxu0 %v2212_v3  ;;  %2112 = vmatprep.subr.bf16.mxu1 %v2212_v3  ;;  %v2224_v11 = vld [vmem:[#allocation6 + $0x7c] ss:$12 sps:$4 sm:$0xff]   ;;  %v2226_v12 = vld [vmem:[#allocation6 + $0x78] ss:$12 sps:$4 sm:$0xff]   ;;  %v2227_v13 = vld [vmem:[#allocation6 + $0x94] ss:$12 sps:$4 sm:$0xff]  }
  0x60   : > { %v2229_v14 = vld [vmem:[#allocation6 + $0x90] ss:$12 sps:$4 sm:$0xff]   ;;  %v2230_v15 = vld [vmem:[#allocation6 + $0xac] ss:$12 sps:$4 sm:$0xff]   ;;  %v2232_v16 = vld [vmem:[#allocation6 + $0xa8] ss:$12 sps:$4 sm:$0xff]  }
  0x61   : > { %v2235_v17 = vld [vmem:[#allocation6 + $0x8] ss:$12 sps:$4 sm:$0xff]   ;;  %v2233_v18 = vld [vmem:[%s2584_s24] sm:$0xff]   ;;  %v2240_v24 = vld [vmem:[#allocation6 + $0x50] ss:$12 sps:$4 sm:$0xff]   ;;  %s2127_s17 = smul.u32 384, %s2580_s15 }
  0x62   : > { %707 = vmatpush1.bf16.msra.mxu0 %v2214_v4  ;;  %2120 = vmatpush1.bf16.msra.mxu1 %v2214_v4  ;;  %v2598_v19 = vld [vmem:[%s2584_s24 + $0x60] sm:$0xff]   ;;  %v2605_v23 = vld [vmem:[%s2584_s24 + $0x68] sm:$0xff]   ;;  %v2241_v26 = vld [vmem:[%s2584_s24 + $0x10] sm:$0xff]   ;;  %s2128_s21 = smul.u32 6144, %s2393_s12  ;;  %s1734_s7 = scalar_lea.sflag [#allocation5], %s2580_s15 }
  0x63   : > { %708 = vmatprep.subr.bf16.mxu0 %v2215_v5  ;;  %2113 = vmatprep.subr.bf16.mxu1 %v2215_v5  ;;  %v2236_v20 = vld [vmem:[#allocation6 + $0x20] ss:$12 sps:$4 sm:$0xff]   ;;  %v2239_v21 = vld [vmem:[#allocation6 + $0x38] ss:$12 sps:$4 sm:$0xff]   ;;  %v2243_v25 = vld [vmem:[#allocation6 + $0x68] ss:$12 sps:$4 sm:$0xff]  }
  0x64   : > { %v2242_v27 = vld [vmem:[%s2584_s24 + $0x70] sm:$0xff]   ;;  %v2244_v28 = vld [vmem:[#allocation6 + $0x80] ss:$12 sps:$4 sm:$0xff]   ;;  %v2247_v29 = vld [vmem:[#allocation6 + $0x98] ss:$12 sps:$4 sm:$0xff]   ;;  %s2635_s19 = scalar_lea.vmem [#allocation8], %s2127_s17  ;;  %s2701_s6 = scalar_lea.hbm %s2759_s2, %s2128_s21 }
  0x65   : > { %v2245_v30 = vld [vmem:[%s2584_s24 + $0x18] sm:$0xff]   ;;  %v2249_v33 = vld [vmem:[%s2584_s24 + $0x20] sm:$0xff]   ;;  %v2250_v34 = vld [vmem:[%s2584_s24 + $0x28] sm:$0xff]   ;;  %s1750_s4 = sshll.u32 %s2635_s19, 4  ;;  %s2410_s23 = smov [#allocation8]   ;;  %s2703_s4 = int_to_ptr.vmem [resolvable:$true] %s1750_s4 }
  0x66   : > { %709 = vmatpush1.bf16.msra.mxu0 %v2217_v6  ;;  %2121 = vmatpush1.bf16.msra.mxu1 %v2217_v6  ;;  %v2246_v31 = vld [vmem:[%s2584_s24 + $0x78] sm:$0xff]   ;;  %v2251_v35 = vld [vmem:[%s2584_s24 + $0x30] sm:$0xff]   ;;  %v2253_v37 = vld [vmem:[%s2584_s24 + $0x40] sm:$0xff]   ;;  %s2315_s27 = scalar_lea.vmem %s2703_s4, 6144  ;;  %s2319_s29 = sshll.u32 %s2410_s23, 4  ;;  %s2320_s29 = int_to_ptr.vmem [resolvable:$false] %s2319_s29 }
  0x67   : > { %710 = vmatprep.subr.bf16.mxu0 %v2218_v7  ;;  %2114 = vmatprep.subr.bf16.mxu1 %v2218_v7  ;;  %v2248_v32 = vld [vmem:[#allocation6 + $0xb0] ss:$12 sps:$4 sm:$0xff]   ;;  %v2254_v38 = vld [vmem:[%s2584_s24 + $0x48] sm:$0xff]   ;;  %p2316_p4 = scmp.ne.s32.totalorder %s2703_s4, %s2315_s27  ;;  %s2321_s30 = scalar_lea.vmem %s2320_s29, 12288 }
  0x68   : > { %v2252_v36 = vld [vmem:[%s2584_s24 + $0x38] sm:$0xff]   ;;  %v2255_v39 = vld [vmem:[%s2584_s24 + $0x50] sm:$0xff]   ;;  %p2322_p12 = scmp.lt.s32.totalorder %s2703_s4, %s2320_s29  ;;  %p2323_p11 = scmp.lt.s32.totalorder %s2321_s30, %s2315_s27 }
  0x69   : > { %v2256_v40 = vld [vmem:[%s2584_s24 + $0x58] sm:$0xff]   ;;  %p2317_p6 = pnand %p2316_p4, %p2524_p10 }
  0x6a   : > { %711 = vmatpush1.bf16.msra.mxu0 %v2220_v8  ;;  %2122 = vmatpush1.bf16.msra.mxu1 %v2220_v8  ;;  %p2324_p0 = por %p2323_p11, %p2322_p12 }
  0x6b   : > { %712 = vmatprep.subr.bf16.mxu0 %v2221_v9  ;;  %2115 = vmatprep.subr.bf16.mxu1 %v2221_v9  ;;  %p2318_p8 = pneg %p2317_p6 }
  0x6d   : > { %p2325_p5 = pnand %p2324_p0, %p2318_p8 }
  0x6e   : > { %713 = vmatpush1.bf16.msra.mxu0 %v2223_v10  ;;  %2123 = vmatpush1.bf16.msra.mxu1 %v2223_v10 }
  0x6f   : > { %714 = vmatprep.subr.bf16.mxu0 %v2224_v11  ;;  %2116 = vmatprep.subr.bf16.mxu1 %v2224_v11 }
  0x72   : > { %715 = vmatpush1.bf16.msra.mxu0 %v2226_v12  ;;  %2124 = vmatpush1.bf16.msra.mxu1 %v2226_v12 }
  0x73   : > { %716 = vmatprep.subr.bf16.mxu0 %v2227_v13  ;;  %2117 = vmatprep.subr.bf16.mxu1 %v2227_v13 }
  0x76   : > { %717 = vmatpush1.bf16.msra.mxu0 %v2229_v14  ;;  %2125 = vmatpush1.bf16.msra.mxu1 %v2229_v14 }
  0x77   : > { %718 = vmatprep.subr.bf16.mxu0 %v2230_v15  ;;  %2118 = vmatprep.subr.bf16.mxu1 %v2230_v15 }
  0x7a   : > { %719 = vmatpush1.bf16.msra.mxu0 %v2232_v16  ;;  %2126 = vmatpush1.bf16.msra.mxu1 %v2232_v16 }
  0x7b   : > { %2063 = vmatprep.subr.bf16.mxu1 %v2235_v17 }
  0x7d   : > { %737 = vmatmul.mubr.bf16.vlgmr.msra.gmra.mrb[0].mxu0 %v2233_v18  ;;  %857 = vmatmul.mubr.bf16.vlgmr.msra.gmra.mrb[0].mxu1 %v2598_v19 }
  0x7e   : > { %2064 = vmatpush3.bf16.msra.mxu1 %v2235_v17  ;;  %746 = vmatprep.mubr.bf16.mxu0 %v2409_v0 }
  0x7f   : > { %2065 = vmatprep.subr.bf16.mxu1 %v2236_v20  ;;  %866 = vmatprep.mubr.bf16.mxu1 %v2409_v0 }
  0x82   : > { %2066 = vmatpush3.bf16.msra.mxu1 %v2236_v20 }
  0x83   : > { %2067 = vmatprep.subr.bf16.mxu1 %v2239_v21 }
  0x85   : > { %747 = vmatmul.mubr.bf16.gmra.mrb[4].mxu0 %v2237_v22  ;;  %867 = vmatmul.mubr.bf16.gmra.mrb[4].mxu1 %v2605_v23 }
  0x86   : > { %2068 = vmatpush3.bf16.msra.mxu1 %v2239_v21  ;;  %756 = vmatprep.mubr.bf16.mxu0 %v2409_v0 }
  0x87   : > { %2069 = vmatprep.subr.bf16.mxu1 %v2240_v24  ;;  %876 = vmatprep.mubr.bf16.mxu1 %v2409_v0 }
  0x8a   : > { %2070 = vmatpush3.bf16.msra.mxu1 %v2240_v24 }
  0x8b   : > { %2071 = vmatprep.subr.bf16.mxu1 %v2243_v25 }
  0x8d   : > { %757 = vmatmul.mubr.bf16.gmra.mrb[8].mxu0 %v2241_v26  ;;  %877 = vmatmul.mubr.bf16.gmra.mrb[8].mxu1 %v2242_v27 }
  0x8e   : > { %2072 = vmatpush3.bf16.msra.mxu1 %v2243_v25  ;;  %766 = vmatprep.mubr.bf16.mxu0 %v2409_v0 }
  0x8f   : > { %2073 = vmatprep.subr.bf16.mxu1 %v2244_v28  ;;  %886 = vmatprep.mubr.bf16.mxu1 %v2409_v0 }
  0x92   : > { %2074 = vmatpush3.bf16.msra.mxu1 %v2244_v28 }
  0x93   : > { %2075 = vmatprep.subr.bf16.mxu1 %v2247_v29 }
  0x95   : > { %767 = vmatmul.mubr.bf16.gmra.mrb[12].mxu0 %v2245_v30  ;;  %887 = vmatmul.mubr.bf16.gmra.mrb[12].mxu1 %v2246_v31 }
  0x96   : > { %2076 = vmatpush3.bf16.msra.mxu1 %v2247_v29  ;;  %776 = vmatprep.mubr.bf16.mxu0 %v2409_v0 }
  0x97   : > { %2077 = vmatprep.subr.bf16.mxu1 %v2248_v32  ;;  %2079 = vmatprep.mubr.bf16.mxu1 %v2233_v18 }
  0x9a   : > { %2078 = vmatpush3.bf16.msra.mxu1 %v2248_v32 }
  0x9d   : > { %777 = vmatmul.mubr.bf16.gmra.mrb[16].mxu0 %v2249_v33  ;;  %2080 = vmatmul.mubr.bf16.vlgmr.msra.gmra.mrb[16].mxu1 %v2237_v22 }
  0x9e   : > { %786 = vmatprep.mubr.bf16.mxu0 %v2409_v0  ;;  %2083 = vmatprep.mubr.bf16.mxu1 %v2241_v26 }
  0xa5   : > { %787 = vmatmul.mubr.bf16.gmra.mrb[20].mxu0 %v2250_v34  ;;  %2084 = vmatmul.mubr.bf16.gmra.mrb[20].mxu1 %v2245_v30 }
  0xa6   : > { %796 = vmatprep.mubr.bf16.mxu0 %v2409_v0  ;;  %2087 = vmatprep.mubr.bf16.mxu1 %v2249_v33 }
  0xad   : > { %797 = vmatmul.mubr.bf16.gmra.mrb[24].mxu0 %v2251_v35  ;;  %2088 = vmatmul.mubr.bf16.gmra.mrb[24].mxu1 %v2250_v34 }
  0xae   : > { %806 = vmatprep.mubr.bf16.mxu0 %v2409_v0  ;;  %2091 = vmatprep.mubr.bf16.mxu1 %v2251_v35 }
  0xb5   : > { %807 = vmatmul.mubr.bf16.gmra.mrb[28].mxu0 %v2252_v36  ;;  %2092 = vmatmul.mubr.bf16.gmra.mrb[28].mxu1 %v2252_v36 }
  0xb6   : > { %816 = vmatprep.mubr.bf16.mxu0 %v2409_v0  ;;  %2095 = vmatprep.mubr.bf16.mxu1 %v2253_v37 }
  0xbd   : > { %817 = vmatmul.mubr.bf16.gmra.mrb[32].mxu0 %v2253_v37  ;;  %2096 = vmatmul.mubr.bf16.gmra.mrb[32].mxu1 %v2254_v38 }
  0xbe   : > { %826 = vmatprep.mubr.bf16.mxu0 %v2409_v0  ;;  %2099 = vmatprep.mubr.bf16.mxu1 %v2255_v39 }
  0xc5   : > { %827 = vmatmul.mubr.bf16.gmra.mrb[36].mxu0 %v2254_v38  ;;  %2100 = vmatmul.mubr.bf16.gmra.mrb[36].mxu1 %v2256_v40 }
  0xc6   : > { %836 = vmatprep.mubr.bf16.mxu0 %v2409_v0  ;;  %2103 = vmatprep.mubr.bf16.mxu1 %v2598_v19 }
  0xcd   : > { %837 = vmatmul.mubr.bf16.gmra.mrb[40].mxu0 %v2255_v39  ;;  %2104 = vmatmul.mubr.bf16.gmra.mrb[40].mxu1 %v2605_v23 }
  0xce   : > { %846 = vmatprep.mubr.bf16.mxu0 %v2409_v0  ;;  %2107 = vmatprep.mubr.bf16.mxu1 %v2242_v27 }
  0xd5   : > { %847 = vmatmul.mubr.bf16.gmra.mrb[44].mxu0 %v2256_v40  ;;  %2108 = vmatmul.mubr.bf16.gmra.mrb[44].mxu1 %v2246_v31 }
 0x150   : > { %v738_v41 = vpop.f32.mrb[0].mxu0  ;;  %v858_v42 = vpop.f32.mrb[0].mxu1 }
 0x151   : > { %v740_v43 = vpop.f32.mrb[1].mxu0  ;;  %v860_v44 = vpop.f32.mrb[1].mxu1 }
 0x152   : > { %v1975_v45 = vpack.c.bf16 %v740_v43, %v738_v41  ;;  %v2023_v46 = vpack.c.bf16 %v860_v44, %v858_v42  ;;  %v742_v47 = vpop.f32.mrb[2].mxu0  ;;  %v862_v48 = vpop.f32.mrb[2].mxu1 }
 0x153   : > { %v744_v49 = vpop.f32.mrb[3].mxu0  ;;  %v864_v50 = vpop.f32.mrb[3].mxu1 }
 0x154   : > { %1669 = vst [vmem:[%s2635_s19] sm:$0xff] %v1975_v45  ;;  %1717 = vst [vmem:[%s2635_s19 + $0x120] sm:$0xff] %v2023_v46  ;;  %v1977_v51 = vpack.c.bf16 %v744_v49, %v742_v47  ;;  %v2025_v52 = vpack.c.bf16 %v864_v50, %v862_v48 }
 0x156   : > { %1671 = vst [vmem:[%s2635_s19 + $0xc] sm:$0xff] %v1977_v51  ;;  %1719 = vst [vmem:[%s2635_s19 + $0x12c] sm:$0xff] %v2025_v52 }
 0x158   : > { %v748_v53 = vpop.f32.mrb[4].mxu0  ;;  %v868_v54 = vpop.f32.mrb[4].mxu1 }
 0x159   : > { %v750_v55 = vpop.f32.mrb[5].mxu0  ;;  %v870_v56 = vpop.f32.mrb[5].mxu1 }
 0x15a   : > { %v1979_v57 = vpack.c.bf16 %v750_v55, %v748_v53  ;;  %v2027_v58 = vpack.c.bf16 %v870_v56, %v868_v54  ;;  %v752_v59 = vpop.f32.mrb[6].mxu0  ;;  %v872_v60 = vpop.f32.mrb[6].mxu1 }
 0x15b   : > { %v754_v61 = vpop.f32.mrb[7].mxu0  ;;  %v874_v62 = vpop.f32.mrb[7].mxu1 }
 0x15c   : > { %1673 = vst [vmem:[%s2635_s19 + $0x18] sm:$0xff] %v1979_v57  ;;  %1721 = vst [vmem:[%s2635_s19 + $0x138] sm:$0xff] %v2027_v58  ;;  %v1981_v63 = vpack.c.bf16 %v754_v61, %v752_v59  ;;  %v2029_v0 = vpack.c.bf16 %v874_v62, %v872_v60 }
 0x15e   : > { %1675 = vst [vmem:[%s2635_s19 + $0x24] sm:$0xff] %v1981_v63  ;;  %1723 = vst [vmem:[%s2635_s19 + $0x144] sm:$0xff] %v2029_v0 }
 0x160   : > { %v758_v1 = vpop.f32.mrb[8].mxu0  ;;  %v878_v2 = vpop.f32.mrb[8].mxu1 }
 0x161   : > { %v760_v3 = vpop.f32.mrb[9].mxu0  ;;  %v880_v4 = vpop.f32.mrb[9].mxu1 }
 0x162   : > { %v1983_v5 = vpack.c.bf16 %v760_v3, %v758_v1  ;;  %v2031_v6 = vpack.c.bf16 %v880_v4, %v878_v2  ;;  %v762_v7 = vpop.f32.mrb[10].mxu0  ;;  %v882_v8 = vpop.f32.mrb[10].mxu1 }
 0x163   : > { %v764_v9 = vpop.f32.mrb[11].mxu0  ;;  %v884_v10 = vpop.f32.mrb[11].mxu1 }
 0x164   : > { %1677 = vst [vmem:[%s2635_s19 + $0x30] sm:$0xff] %v1983_v5  ;;  %1725 = vst [vmem:[%s2635_s19 + $0x150] sm:$0xff] %v2031_v6  ;;  %v1985_v11 = vpack.c.bf16 %v764_v9, %v762_v7  ;;  %v2033_v12 = vpack.c.bf16 %v884_v10, %v882_v8 }
 0x166   : > { %1679 = vst [vmem:[%s2635_s19 + $0x3c] sm:$0xff] %v1985_v11  ;;  %1727 = vst [vmem:[%s2635_s19 + $0x15c] sm:$0xff] %v2033_v12 }
 0x168   : > { %v768_v13 = vpop.f32.mrb[12].mxu0  ;;  %v888_v14 = vpop.f32.mrb[12].mxu1 }
 0x169   : > { %v770_v15 = vpop.f32.mrb[13].mxu0  ;;  %v890_v16 = vpop.f32.mrb[13].mxu1 }
 0x16a   : > { %v1987_v17 = vpack.c.bf16 %v770_v15, %v768_v13  ;;  %v2035_v18 = vpack.c.bf16 %v890_v16, %v888_v14  ;;  %v772_v19 = vpop.f32.mrb[14].mxu0  ;;  %v892_v20 = vpop.f32.mrb[14].mxu1 }
 0x16b   : > { %v774_v21 = vpop.f32.mrb[15].mxu0  ;;  %v894_v22 = vpop.f32.mrb[15].mxu1 }
 0x16c   : > { %1681 = vst [vmem:[%s2635_s19 + $0x48] sm:$0xff] %v1987_v17  ;;  %1729 = vst [vmem:[%s2635_s19 + $0x168] sm:$0xff] %v2035_v18  ;;  %v1989_v23 = vpack.c.bf16 %v774_v21, %v772_v19  ;;  %v2037_v24 = vpack.c.bf16 %v894_v22, %v892_v20 }
 0x16e   : > { %1683 = vst [vmem:[%s2635_s19 + $0x54] sm:$0xff] %v1989_v23  ;;  %1731 = vst [vmem:[%s2635_s19 + $0x174] sm:$0xff] %v2037_v24 }
 0x170   : > { %v778_v25 = vpop.f32.mrb[16].mxu0  ;;  %v2081_v26 = vpop.f32.mrb[16].mxu1 }
 0x171   : > { %v1980_v27 = vpack.c.bf16 %v2081_v26, %v2081_v26  ;;  %v780_v28 = vpop.f32.mrb[17].mxu0  ;;  %v931_v29 = vpop.f32.mrb[17].mxu1 }
 0x172   : > { %v1991_v30 = vpack.c.bf16 %v780_v28, %v778_v25  ;;  %v1976_v31 = vpack.c.bf16 %v931_v29, %v931_v29  ;;  %v782_v32 = vpop.f32.mrb[18].mxu0  ;;  %v2082_v33 = vpop.f32.mrb[18].mxu1 }
 0x173   : > { %1674 = vst [vmem:[%s2635_s19 + $0x20] sm:$0xf] %v1980_v27  ;;  %v1982_v34 = vpack.c.bf16 %v2082_v33, %v2082_v33  ;;  %v784_v35 = vpop.f32.mrb[19].mxu0  ;;  %v934_v36 = vpop.f32.mrb[19].mxu1 }
 0x174   : > { %1685 = vst [vmem:[%s2635_s19 + $0x60] sm:$0xff] %v1991_v30  ;;  %1670 = vst [vmem:[%s2635_s19 + $0x8] sm:$0xf] %v1976_v31  ;;  %v1993_v37 = vpack.c.bf16 %v784_v35, %v782_v32  ;;  %v1978_v38 = vpack.c.bf16 %v934_v36, %v934_v36 }
 0x175   : > { %1676 = vst [vmem:[%s2635_s19 + $0x2c] sm:$0xf] %v1982_v34 }
 0x176   : > { %1687 = vst [vmem:[%s2635_s19 + $0x6c] sm:$0xff] %v1993_v37  ;;  %1672 = vst [vmem:[%s2635_s19 + $0x14] sm:$0xf] %v1978_v38 }
 0x178   : > { %v788_v39 = vpop.f32.mrb[20].mxu0  ;;  %v2085_v40 = vpop.f32.mrb[20].mxu1 }
 0x179   : > { %v1988_v41 = vpack.c.bf16 %v2085_v40, %v2085_v40  ;;  %v790_v42 = vpop.f32.mrb[21].mxu0  ;;  %v947_v43 = vpop.f32.mrb[21].mxu1 }
 0x17a   : > { %v1995_v44 = vpack.c.bf16 %v790_v42, %v788_v39  ;;  %v1984_v45 = vpack.c.bf16 %v947_v43, %v947_v43  ;;  %v792_v46 = vpop.f32.mrb[22].mxu0  ;;  %v2086_v47 = vpop.f32.mrb[22].mxu1 }
 0x17b   : > { %1682 = vst [vmem:[%s2635_s19 + $0x50] sm:$0xf] %v1988_v41  ;;  %v1990_v48 = vpack.c.bf16 %v2086_v47, %v2086_v47  ;;  %v794_v49 = vpop.f32.mrb[23].mxu0  ;;  %v950_v50 = vpop.f32.mrb[23].mxu1 }
 0x17c   : > { %1689 = vst [vmem:[%s2635_s19 + $0x78] sm:$0xff] %v1995_v44  ;;  %1678 = vst [vmem:[%s2635_s19 + $0x38] sm:$0xf] %v1984_v45  ;;  %v1997_v51 = vpack.c.bf16 %v794_v49, %v792_v46  ;;  %v1986_v52 = vpack.c.bf16 %v950_v50, %v950_v50 }
 0x17d   : > { %1684 = vst [vmem:[%s2635_s19 + $0x5c] sm:$0xf] %v1990_v48 }
 0x17e   : > { %1691 = vst [vmem:[%s2635_s19 + $0x84] sm:$0xff] %v1997_v51  ;;  %1680 = vst [vmem:[%s2635_s19 + $0x44] sm:$0xf] %v1986_v52 }
 0x180   : > { %v798_v53 = vpop.f32.mrb[24].mxu0  ;;  %v2089_v54 = vpop.f32.mrb[24].mxu1 }
 0x181   : > { %v1996_v55 = vpack.c.bf16 %v2089_v54, %v2089_v54  ;;  %v800_v56 = vpop.f32.mrb[25].mxu0  ;;  %v963_v57 = vpop.f32.mrb[25].mxu1 }
 0x182   : > { %v1999_v58 = vpack.c.bf16 %v800_v56, %v798_v53  ;;  %v1992_v59 = vpack.c.bf16 %v963_v57, %v963_v57  ;;  %v802_v60 = vpop.f32.mrb[26].mxu0  ;;  %v2090_v61 = vpop.f32.mrb[26].mxu1 }
 0x183   : > { %1690 = vst [vmem:[%s2635_s19 + $0x80] sm:$0xf] %v1996_v55  ;;  %v1998_v62 = vpack.c.bf16 %v2090_v61, %v2090_v61  ;;  %v804_v63 = vpop.f32.mrb[27].mxu0  ;;  %v966_v0 = vpop.f32.mrb[27].mxu1 }
 0x184   : > { %1693 = vst [vmem:[%s2635_s19 + $0x90] sm:$0xff] %v1999_v58  ;;  %1686 = vst [vmem:[%s2635_s19 + $0x68] sm:$0xf] %v1992_v59  ;;  %v2001_v1 = vpack.c.bf16 %v804_v63, %v802_v60  ;;  %v1994_v2 = vpack.c.bf16 %v966_v0, %v966_v0 }
 0x185   : > { %1692 = vst [vmem:[%s2635_s19 + $0x8c] sm:$0xf] %v1998_v62 }
 0x186   : > { %1695 = vst [vmem:[%s2635_s19 + $0x9c] sm:$0xff] %v2001_v1  ;;  %1688 = vst [vmem:[%s2635_s19 + $0x74] sm:$0xf] %v1994_v2 }
 0x188   : > { %v808_v3 = vpop.f32.mrb[28].mxu0  ;;  %v2093_v4 = vpop.f32.mrb[28].mxu1 }
 0x189   : > { %v2004_v5 = vpack.c.bf16 %v2093_v4, %v2093_v4  ;;  %v810_v6 = vpop.f32.mrb[29].mxu0  ;;  %v979_v7 = vpop.f32.mrb[29].mxu1 }
 0x18a   : > { %v2003_v8 = vpack.c.bf16 %v810_v6, %v808_v3  ;;  %v2000_v9 = vpack.c.bf16 %v979_v7, %v979_v7  ;;  %v812_v10 = vpop.f32.mrb[30].mxu0  ;;  %v2094_v11 = vpop.f32.mrb[30].mxu1 }
 0x18b   : > { %1698 = vst [vmem:[%s2635_s19 + $0xb0] sm:$0xf] %v2004_v5  ;;  %v2006_v12 = vpack.c.bf16 %v2094_v11, %v2094_v11  ;;  %v814_v13 = vpop.f32.mrb[31].mxu0  ;;  %v982_v14 = vpop.f32.mrb[31].mxu1 }
 0x18c   : > { %1697 = vst [vmem:[%s2635_s19 + $0xa8] sm:$0xff] %v2003_v8  ;;  %1694 = vst [vmem:[%s2635_s19 + $0x98] sm:$0xf] %v2000_v9  ;;  %v2005_v15 = vpack.c.bf16 %v814_v13, %v812_v10  ;;  %v2002_v16 = vpack.c.bf16 %v982_v14, %v982_v14 }
 0x18d   : > { %1700 = vst [vmem:[%s2635_s19 + $0xbc] sm:$0xf] %v2006_v12 }
 0x18e   : > { %1699 = vst [vmem:[%s2635_s19 + $0xb4] sm:$0xff] %v2005_v15  ;;  %1696 = vst [vmem:[%s2635_s19 + $0xa4] sm:$0xf] %v2002_v16 }
 0x190   : > { %v818_v17 = vpop.f32.mrb[32].mxu0  ;;  %v2097_v18 = vpop.f32.mrb[32].mxu1 }
 0x191   : > { %v2012_v19 = vpack.c.bf16 %v2097_v18, %v2097_v18  ;;  %v820_v20 = vpop.f32.mrb[33].mxu0  ;;  %v995_v21 = vpop.f32.mrb[33].mxu1 }
 0x192   : > { %v2007_v22 = vpack.c.bf16 %v820_v20, %v818_v17  ;;  %v2008_v23 = vpack.c.bf16 %v995_v21, %v995_v21  ;;  %v822_v24 = vpop.f32.mrb[34].mxu0  ;;  %v2098_v25 = vpop.f32.mrb[34].mxu1 }
 0x193   : > { %1706 = vst [vmem:[%s2635_s19 + $0xe0] sm:$0xf] %v2012_v19  ;;  %v2014_v26 = vpack.c.bf16 %v2098_v25, %v2098_v25  ;;  %v824_v27 = vpop.f32.mrb[35].mxu0  ;;  %v998_v28 = vpop.f32.mrb[35].mxu1 }
 0x194   : > { %1701 = vst [vmem:[%s2635_s19 + $0xc0] sm:$0xff] %v2007_v22  ;;  %1702 = vst [vmem:[%s2635_s19 + $0xc8] sm:$0xf] %v2008_v23  ;;  %v2009_v29 = vpack.c.bf16 %v824_v27, %v822_v24  ;;  %v2010_v30 = vpack.c.bf16 %v998_v28, %v998_v28 }
 0x195   : > { %1708 = vst [vmem:[%s2635_s19 + $0xec] sm:$0xf] %v2014_v26 }
 0x196   : > { %1703 = vst [vmem:[%s2635_s19 + $0xcc] sm:$0xff] %v2009_v29  ;;  %1704 = vst [vmem:[%s2635_s19 + $0xd4] sm:$0xf] %v2010_v30 }
 0x198   : > { %v828_v31 = vpop.f32.mrb[36].mxu0  ;;  %v2101_v32 = vpop.f32.mrb[36].mxu1 }
 0x199   : > { %v2020_v33 = vpack.c.bf16 %v2101_v32, %v2101_v32  ;;  %v830_v34 = vpop.f32.mrb[37].mxu0  ;;  %v1011_v35 = vpop.f32.mrb[37].mxu1 }
 0x19a   : > { %v2011_v36 = vpack.c.bf16 %v830_v34, %v828_v31  ;;  %v2016_v37 = vpack.c.bf16 %v1011_v35, %v1011_v35  ;;  %v832_v38 = vpop.f32.mrb[38].mxu0  ;;  %v2102_v39 = vpop.f32.mrb[38].mxu1 }
 0x19b   : > { %1714 = vst [vmem:[%s2635_s19 + $0x110] sm:$0xf] %v2020_v33  ;;  %v2022_v40 = vpack.c.bf16 %v2102_v39, %v2102_v39  ;;  %v834_v41 = vpop.f32.mrb[39].mxu0  ;;  %v1014_v42 = vpop.f32.mrb[39].mxu1 }
 0x19c   : > { %1705 = vst [vmem:[%s2635_s19 + $0xd8] sm:$0xff] %v2011_v36  ;;  %1710 = vst [vmem:[%s2635_s19 + $0xf8] sm:$0xf] %v2016_v37  ;;  %v2013_v43 = vpack.c.bf16 %v834_v41, %v832_v38  ;;  %v2018_v44 = vpack.c.bf16 %v1014_v42, %v1014_v42 }
 0x19d   : > { %1716 = vst [vmem:[%s2635_s19 + $0x11c] sm:$0xf] %v2022_v40 }
 0x19e   : > { %1707 = vst [vmem:[%s2635_s19 + $0xe4] sm:$0xff] %v2013_v43  ;;  %1712 = vst [vmem:[%s2635_s19 + $0x104] sm:$0xf] %v2018_v44 }
 0x1a0   : > { %v838_v45 = vpop.f32.mrb[40].mxu0  ;;  %v2105_v46 = vpop.f32.mrb[40].mxu1 }
 0x1a1   : > { %v2028_v47 = vpack.c.bf16 %v2105_v46, %v2105_v46  ;;  %v840_v48 = vpop.f32.mrb[41].mxu0  ;;  %v1027_v49 = vpop.f32.mrb[41].mxu1 }
 0x1a2   : > { %v2015_v50 = vpack.c.bf16 %v840_v48, %v838_v45  ;;  %v2024_v51 = vpack.c.bf16 %v1027_v49, %v1027_v49  ;;  %v842_v52 = vpop.f32.mrb[42].mxu0  ;;  %v2106_v53 = vpop.f32.mrb[42].mxu1 }
 0x1a3   : > { %1722 = vst [vmem:[%s2635_s19 + $0x140] sm:$0xf] %v2028_v47  ;;  %v2030_v54 = vpack.c.bf16 %v2106_v53, %v2106_v53  ;;  %v844_v55 = vpop.f32.mrb[43].mxu0  ;;  %v1030_v56 = vpop.f32.mrb[43].mxu1 }
 0x1a4   : > { %1709 = vst [vmem:[%s2635_s19 + $0xf0] sm:$0xff] %v2015_v50  ;;  %1718 = vst [vmem:[%s2635_s19 + $0x128] sm:$0xf] %v2024_v51  ;;  %v2017_v57 = vpack.c.bf16 %v844_v55, %v842_v52  ;;  %v2026_v58 = vpack.c.bf16 %v1030_v56, %v1030_v56 }
 0x1a5   : > { %1724 = vst [vmem:[%s2635_s19 + $0x14c] sm:$0xf] %v2030_v54 }
 0x1a6   : > { %1711 = vst [vmem:[%s2635_s19 + $0xfc] sm:$0xff] %v2017_v57  ;;  %1720 = vst [vmem:[%s2635_s19 + $0x134] sm:$0xf] %v2026_v58 }
 0x1a8   : > { %v848_v59 = vpop.f32.mrb[44].mxu0  ;;  %v2109_v60 = vpop.f32.mrb[44].mxu1 }
 0x1a9   : > { %v2036_v61 = vpack.c.bf16 %v2109_v60, %v2109_v60  ;;  %v850_v62 = vpop.f32.mrb[45].mxu0  ;;  %v1043_v63 = vpop.f32.mrb[45].mxu1 }
 0x1aa   : > { %v2019_v0 = vpack.c.bf16 %v850_v62, %v848_v59  ;;  %v2032_v1 = vpack.c.bf16 %v1043_v63, %v1043_v63  ;;  %v852_v2 = vpop.f32.mrb[46].mxu0  ;;  %v2110_v3 = vpop.f32.mrb[46].mxu1 }
 0x1ab   : > { %1730 = vst [vmem:[%s2635_s19 + $0x170] sm:$0xf] %v2036_v61  ;;  %v2038_v4 = vpack.c.bf16 %v2110_v3, %v2110_v3  ;;  %v854_v5 = vpop.f32.mrb[47].mxu0  ;;  %v1046_v6 = vpop.f32.mrb[47].mxu1 }
 0x1ac   : > { %1713 = vst [vmem:[%s2635_s19 + $0x108] sm:$0xff] %v2019_v0  ;;  %1726 = vst [vmem:[%s2635_s19 + $0x158] sm:$0xf] %v2032_v1  ;;  %v2021_v7 = vpack.c.bf16 %v854_v5, %v852_v2  ;;  %v2034_v8 = vpack.c.bf16 %v1046_v6, %v1046_v6 }
 0x1ad   : > { %1732 = vst [vmem:[%s2635_s19 + $0x17c] sm:$0xf] %v2038_v4 }
 0x1ae   : > { %1715 = vst [vmem:[%s2635_s19 + $0x114] sm:$0xff] %v2021_v7  ;;  %1728 = vst [vmem:[%s2635_s19 + $0x164] sm:$0xf] %v2034_v8 }
 0x1af   : > { %2328 = shalt.err (!%p2325_p5)
}
 0x1b0   : > { %s2329_s3 = scalar_lea.hbm %s2701_s6, 6144  ;;  %s2333_s16 = scalar_lea.hbm %s2759_s2, 12288 }
 0x1b1   : > { %p2330_p9 = scmp.ne.s32.totalorder %s2701_s6, %s2329_s3  ;;  %p2334_p3 = scmp.lt.u32.totalorder %s2701_s6, %s2759_s2 }
 0x1b2   : > { %p2335_p7 = scmp.lt.u32.totalorder %s2333_s16, %s2329_s3  ;;  %p2337_p4 = scmp.lt.u32.totalorder %s2329_s3, %s2701_s6 }
 0x1b3   : > { %p2331_p1 = pnand %p2330_p9, %p2524_p10 }
 0x1b4   : > { %p2336_p13 = por %p2335_p7, %p2334_p3 }
 0x1b5   : > { %p2332_p2 = pneg %p2331_p1 }
 0x1b6   : > { %p2338_p6 = por %p2337_p4, %p2336_p13 }
 0x1b8   : > { %p2339_p8 = pnand %p2338_p6, %p2332_p2 }
 0x1ba   : > { %2342 = shalt.err (!%p2339_p8)
}
 0x1bb   : > { %s2411_s17 = smov 192   ;;  %s2412_s19 = smov 12  }
 0x1bc   : > { %2135 = dma.vmem_to_hbm [thread:$0]  (%p2524_p10), %s2703_s4, 6144, %s2701_s6, %s1734_s7, %s2411_s17, %s2411_s17, %s2412_s19  }
 0x1bd PF: > { %s1765_s21 = sand.u32 1, %s2381_s9   ;;  %p2777_p12 = scmp.ne.s32.totalorder %s2767_s20, 0 }
 0x1be   : > { %p2778_p11 = scmp.ge.s32.totalorder %s2401_s14, 2  ;;  %s1766_s12 = scalar_lea.sflag [#allocation5], %s1765_s21 }
 0x1c0   : > { %p2146_p0 = pnand %p2778_p11, %p2777_p12 }
 0x1c2   : > { %2376 = dma.done.wait (!%p2146_p0), %s1766_s12, 6144  }
 0x1c3   : > { %2378 = vsyncadd (!%p2146_p0), %s1766_s12, 4294961152  ;;  %s19_s14 = sadd.s32 1, %s2401_s14   ;;  %s2779_s9 = smov %s2385_s10 }
 0x1c4   : > { %p16_p5 = scmp.ge.s32.totalorder %s19_s14, 4   ;;  %s2780_s10 = smov %s2389_s11 }
 0x1c5   : > { %s2781_s11 = smov %s2533_s28  ;;  %s2782_s12 = smov %s2397_s13 }
 0x1c6   : > { %s2783_s13 = smov %s2785_s25  ;;  %18 = sbr.rel (!%p16_p5) target bundleno = 7 (0x7), region = 86 }
 0x1cd   :  { %1771 = vsyncpa [#allocation4], 1 }
 0x1ce   :  { %1773 = vsyncpa [#allocation4 + $0x1], 1 }
 0x1cf   :  { %1774 = vsyncpa [#allocation7], 1 }
 0x1d0   :  { %1775 = vsyncpa [#allocation5], 1 }
 0x1d1   :  { %1777 = vsyncpa [#allocation5 + $0x1], 1 }

</bundles_post_ra>
